<compile_context>
chip_gen: v5e
topology: v5e:2x2
jax: 0.10.0
libtpu: 0.0.40
codegen_flags: <defaults>
</compile_context>

<pallas_src>
import functools

import jax
import jax.numpy as jnp
from jax.experimental import pallas as pl
from jax.experimental.pallas import tpu as pltpu


def _critic_kernel(o_ref, a_ref, w1o_ref, w1a_ref, b1_ref, w2_ref, b2_ref,
                   w3_ref, b3_ref, out_ref, *, nsub, sb):
    """Activations live in the transposed (H, batch) layout throughout."""
    # Resident weights (tiny; VMEM->vreg reload per grid step is negligible).
    w1o = w1o_ref[...]          # (H, obs_dim) == fc1.W[:obs, :].T
    w1a = w1a_ref[...]          # (H, act_dim) == fc1.W[obs:, :].T
    b1 = b1_ref[...]            # (H, 1)
    w2 = w2_ref[...]            # (H, H)       == fc2.W.T  (out x in)
    b2 = b2_ref[...]            # (H, 1)
    w3 = w3_ref[...]            # (1, H)       == fc3.W.T
    b3 = b3_ref[0, 0]           # scalar (SMEM)

    # A @ B^T : contract the last dim of both operands.
    ct = (((1,), (1,)), ((), ()))

    def compute(o_blk, a_blk):
        # o_blk: (sb, obs), a_blk: (sb, act)  ->  q: (1, sb)
        h1 = jax.lax.dot_general(w1o, o_blk, ct,
                                 preferred_element_type=jnp.float32)
        h1 = h1 + jax.lax.dot_general(w1a, a_blk, ct,
                                      preferred_element_type=jnp.float32)
        h1 = jnp.maximum(h1 + b1, 0.0)                            # (H, sb)
        h2 = jnp.dot(w2, h1, preferred_element_type=jnp.float32)  # (H, sb)
        h2 = jnp.maximum(h2 + b2, 0.0)
        q = jnp.dot(w3, h2, preferred_element_type=jnp.float32)   # (1, sb)
        return q + b3

    if nsub == 1:
        out_ref[...] = compute(o_ref[...], a_ref[...]).astype(out_ref.dtype)
    else:
        # Static sub-block loop over the batch lanes of the tile: keeps the
        # (H, sb) activations register-resident instead of spilling (H, TB).
        for c in range(nsub):
            s = c * sb                                   # static, sb % 128 == 0
            q = compute(o_ref[pl.ds(s, sb), :], a_ref[pl.ds(s, sb), :])
            out_ref[:, pl.ds(s, sb)] = q.astype(out_ref.dtype)


def _round_up(x, m):
    return ((x + m - 1) // m) * m


@functools.partial(jax.jit, static_argnames=("block_b",))
def critic_forward(o, a, params, *, block_b=8192):
    """o: (B, obs_dim), a: (B, act_dim). Returns (B, 1) float32."""
    B, obs_dim = o.shape
    act_dim = a.shape[1]
    w1, b1, w2, b2, w3, b3 = params
    H = w1.shape[1]

    # Tiny wrapper-side weight re-layouts (<= H*H elements each; negligible),
    # so the kernel's (H, batch) layout needs no in-kernel weight transposes.
    w1oT = w1[:obs_dim].T               # (H, obs_dim)
    w1aT = w1[obs_dim:].T               # (H, act_dim)
    w2T = w2.T                          # (H, H)
    w3T = w3.T                          # (1, H)
    b1c = b1.reshape(H, 1)
    b2c = b2.reshape(H, 1)
    b3s = b3.reshape(1, 1)

    # --- Batch tiling -------------------------------------------------------
    SB = 512                                    # inner sub-block (lanes)
    blk = max(SB, (block_b // SB) * SB)         # tile cap, multiple of SB
    # Aim for >= 2 grid steps (v7x has 2 TensorCores); otherwise a single
    # full-batch block (block dims equal to array dims are always legal).
    tb = min(blk, _round_up(pl.cdiv(B, 2), SB))
    if tb >= B:
        tb = B
    if tb >= SB and tb % SB == 0:
        nsub, sb = tb // SB, SB
    else:
        nsub, sb = 1, tb
    grid = (pl.cdiv(B, tb),)                    # ragged last block: no jnp.pad

    flops = 2 * B * ((obs_dim + act_dim) * H + H * H + H)
    bytes_accessed = 4 * (B * (obs_dim + act_dim + 1)
                          + (obs_dim + act_dim) * H + H * H + H
                          + 2 * H + 1)

    kernel = functools.partial(_critic_kernel, nsub=nsub, sb=sb)

    out_t = pl.pallas_call(
        kernel,
        out_shape=jax.ShapeDtypeStruct((1, B), jnp.float32),
        grid=grid,
        in_specs=[
            pl.BlockSpec((tb, obs_dim), lambda i: (i, 0)),       # o tile
            pl.BlockSpec((tb, act_dim), lambda i: (i, 0)),       # a tile
            pl.BlockSpec((H, obs_dim), lambda i: (0, 0)),        # w1oT resident
            pl.BlockSpec((H, act_dim), lambda i: (0, 0)),        # w1aT resident
            pl.BlockSpec((H, 1), lambda i: (0, 0)),              # b1   resident
            pl.BlockSpec((H, H), lambda i: (0, 0)),              # w2T  resident
            pl.BlockSpec((H, 1), lambda i: (0, 0)),              # b2   resident
            pl.BlockSpec((1, H), lambda i: (0, 0)),              # w3T  resident
            pl.BlockSpec(memory_space=pltpu.MemorySpace.SMEM),   # b3 scalar
        ],
        out_specs=pl.BlockSpec((1, tb), lambda i: (0, i)),
        compiler_params=pltpu.CompilerParams(
            dimension_semantics=("parallel",),
            vmem_limit_bytes=48 * 1024 * 1024),
        cost_estimate=pl.CostEstimate(
            flops=int(flops), transcendentals=0,
            bytes_accessed=int(bytes_accessed)),
    )(o, a, w1oT, w1aT, b1c, w2T, b2c, w3T, b3s)

    # (1, B) lane-dense kernel output -> (B, 1) to match the PyTorch module.
    return out_t.reshape(B, 1)


def init_critic_params(key, input_dim, hidden_dim):
    """Deterministic synthetic parameters with PyTorch-Linear-like scaling."""
    ks = jax.random.split(key, 6)

    def uniform(k, shape, fan_in):
        bound = 1.0 / jnp.sqrt(fan_in)
        return jax.random.uniform(k, shape, jnp.float32, -bound, bound)

    w1 = uniform(ks[0], (input_dim, hidden_dim), input_dim)
    b1 = uniform(ks[1], (1, hidden_dim), input_dim)
    w2 = uniform(ks[2], (hidden_dim, hidden_dim), hidden_dim)
    b2 = uniform(ks[3], (1, hidden_dim), hidden_dim)
    w3 = uniform(ks[4], (hidden_dim, 1), hidden_dim)
    b3 = uniform(ks[5], (1, 1), hidden_dim)
    return (w1, b1, w2, b2, w3, b3)


def critic_reference(o, a, params):
    """Pure-JAX reference matching the PyTorch forward."""
    w1, b1, w2, b2, w3, b3 = params
    x = jnp.concatenate([o, a], axis=1)
    x = jax.nn.relu(x @ w1 + b1)
    x = jax.nn.relu(x @ w2 + b2)
    return x @ w3 + b3


if __name__ == "__main__":
    # Small shapes consistent with the module: obs_dim=12, act_dim=4 -> input_dim=16
    batch, obs_dim, act_dim, hidden_dim = 8, 12, 4, 32
    input_dim = obs_dim + act_dim

    key = jax.random.PRNGKey(0)
    k_o, k_a, k_p = jax.random.split(key, 3)
    params = init_critic_params(k_p, input_dim, hidden_dim)

    # 1) Small batch: single grid step, blocks == full arrays, no inner loop.
    o = jax.random.normal(k_o, (batch, obs_dim), jnp.float32)
    a = jax.random.normal(k_a, (batch, act_dim), jnp.float32)
    out = jax.block_until_ready(critic_forward(o, a, params))
    ref = critic_reference(o, a, params)
    assert out.shape == (batch, 1), out.shape
    assert jnp.allclose(out, ref, atol=1e-4, rtol=1e-4), (
        f"max abs err {jnp.max(jnp.abs(out - ref))}")

    # 2) Larger batch: exercises the multi-step grid, the ragged last block
    #    (no padding), and the inner 512-lane sub-block loop.
    big_b = 2500
    ob = jax.random.normal(k_o, (big_b, obs_dim), jnp.float32)
    ab = jax.random.normal(k_a, (big_b, act_dim), jnp.float32)
    out_b = jax.block_until_ready(critic_forward(ob, ab, params))
    ref_b = critic_reference(ob, ab, params)
    assert out_b.shape == (big_b, 1), out_b.shape
    assert jnp.allclose(out_b, ref_b, atol=1e-4, rtol=1e-4), (
        f"max abs err {jnp.max(jnp.abs(out_b - ref_b))}")

    print("KERNEL_OK")
</pallas_src>

<mosaic_0001>
module attributes {stable_mosaic.version = 11 : i64} {
  func.func @_critic_kernel(%arg0: i32, %arg1: memref<8x12xf32, #tpu.memory_space<vmem>>, %arg2: memref<8x4xf32, #tpu.memory_space<vmem>>, %arg3: memref<32x12xf32, #tpu.memory_space<vmem>>, %arg4: memref<32x4xf32, #tpu.memory_space<vmem>>, %arg5: memref<32x1xf32, #tpu.memory_space<vmem>>, %arg6: memref<32x32xf32, #tpu.memory_space<vmem>>, %arg7: memref<32x1xf32, #tpu.memory_space<vmem>>, %arg8: memref<1x32xf32, #tpu.memory_space<vmem>>, %arg9: memref<1x1xf32, #tpu.memory_space<smem>>, %arg10: memref<1x8xf32, #tpu.memory_space<vmem>>) attributes {dimension_semantics = [#tpu.dimension_semantics<parallel>], iteration_bounds = array<i64: 1>, scalar_prefetch = 0 : i64, scratch_operands = 0 : i64, tpu.core_type = #tpu.core_type<tc>, window_params = [{transform_indices = @transform_0, window_bounds = array<i64: 8, 12>}, {transform_indices = @transform_1, window_bounds = array<i64: 8, 4>}, {pipeline_mode = #tpu.pipeline_mode<synchronous>, transform_indices = @transform_2, window_bounds = array<i64: 32, 12>}, {pipeline_mode = #tpu.pipeline_mode<synchronous>, transform_indices = @transform_3, window_bounds = array<i64: 32, 4>}, {pipeline_mode = #tpu.pipeline_mode<synchronous>, transform_indices = @transform_4, window_bounds = array<i64: 32, 1>}, {pipeline_mode = #tpu.pipeline_mode<synchronous>, transform_indices = @transform_5, window_bounds = array<i64: 32, 32>}, {pipeline_mode = #tpu.pipeline_mode<synchronous>, transform_indices = @transform_6, window_bounds = array<i64: 32, 1>}, {pipeline_mode = #tpu.pipeline_mode<synchronous>, transform_indices = @transform_7, window_bounds = array<i64: 1, 32>}, {transform_indices = @transform_8, window_bounds = array<i64: 1, 1>}, {transform_indices = @transform_9, window_bounds = array<i64: 1, 8>}]} {
    %c0 = arith.constant 0 : index
    %c0_0 = arith.constant 0 : index
    %0 = vector.load %arg3[%c0, %c0_0] : memref<32x12xf32, #tpu.memory_space<vmem>>, vector<32x12xf32>
    %c0_1 = arith.constant 0 : index
    %c0_2 = arith.constant 0 : index
    %1 = vector.load %arg4[%c0_1, %c0_2] : memref<32x4xf32, #tpu.memory_space<vmem>>, vector<32x4xf32>
    %c0_3 = arith.constant 0 : index
    %c0_4 = arith.constant 0 : index
    %2 = vector.load %arg5[%c0_3, %c0_4] : memref<32x1xf32, #tpu.memory_space<vmem>>, vector<32x1xf32>
    %c0_5 = arith.constant 0 : index
    %c0_6 = arith.constant 0 : index
    %3 = vector.load %arg6[%c0_5, %c0_6] : memref<32x32xf32, #tpu.memory_space<vmem>>, vector<32x32xf32>
    %c0_7 = arith.constant 0 : index
    %c0_8 = arith.constant 0 : index
    %4 = vector.load %arg7[%c0_7, %c0_8] : memref<32x1xf32, #tpu.memory_space<vmem>>, vector<32x1xf32>
    %c0_9 = arith.constant 0 : index
    %c0_10 = arith.constant 0 : index
    %5 = vector.load %arg8[%c0_9, %c0_10] : memref<1x32xf32, #tpu.memory_space<vmem>>, vector<1x32xf32>
    %c0_11 = arith.constant 0 : index
    %c0_12 = arith.constant 0 : index
    %6 = memref.load %arg9[%c0_11, %c0_12] : memref<1x1xf32, #tpu.memory_space<smem>>
    %c0_13 = arith.constant 0 : index
    %c0_14 = arith.constant 0 : index
    %7 = vector.load %arg1[%c0_13, %c0_14] : memref<8x12xf32, #tpu.memory_space<vmem>>, vector<8x12xf32>
    %c0_15 = arith.constant 0 : index
    %c0_16 = arith.constant 0 : index
    %8 = vector.load %arg2[%c0_15, %c0_16] : memref<8x4xf32, #tpu.memory_space<vmem>>, vector<8x4xf32>
    %cst = arith.constant dense<0.000000e+00> : vector<32x8xf32>
    %9 = tpu.matmul %0, %7, %cst {dimension_numbers = #tpu.dot_dimension_numbers<[1], [1], [0], [0], [0, 0, 1, 0], [], []>} : vector<32x12xf32>, vector<8x12xf32>, vector<32x8xf32> -> vector<32x8xf32>
    %cst_17 = arith.constant dense<0.000000e+00> : vector<32x8xf32>
    %10 = tpu.matmul %1, %8, %cst_17 {dimension_numbers = #tpu.dot_dimension_numbers<[1], [1], [0], [0], [0, 0, 1, 0], [], []>} : vector<32x4xf32>, vector<8x4xf32>, vector<32x8xf32> -> vector<32x8xf32>
    %11 = arith.addf %9, %10 : vector<32x8xf32>
    %12 = vector.broadcast %2 : vector<32x1xf32> to vector<32x8xf32>
    %13 = arith.addf %11, %12 : vector<32x8xf32>
    %cst_18 = arith.constant 0.000000e+00 : f32
    %14 = vector.broadcast %cst_18 : f32 to vector<32x8xf32>
    %15 = arith.maximumf %13, %14 : vector<32x8xf32>
    %cst_19 = arith.constant dense<0.000000e+00> : vector<32x8xf32>
    %16 = tpu.matmul %3, %15, %cst_19 {dimension_numbers = #tpu.dot_dimension_numbers<[1], [0], [0], [1], [0, 0, 1, 1], [], []>} : vector<32x32xf32>, vector<32x8xf32>, vector<32x8xf32> -> vector<32x8xf32>
    %17 = vector.broadcast %4 : vector<32x1xf32> to vector<32x8xf32>
    %18 = arith.addf %16, %17 : vector<32x8xf32>
    %cst_20 = arith.constant 0.000000e+00 : f32
    %19 = vector.broadcast %cst_20 : f32 to vector<32x8xf32>
    %20 = arith.maximumf %18, %19 : vector<32x8xf32>
    %cst_21 = arith.constant dense<0.000000e+00> : vector<1x8xf32>
    %21 = tpu.matmul %5, %20, %cst_21 {dimension_numbers = #tpu.dot_dimension_numbers<[1], [0], [0], [1], [0, 0, 1, 1], [], []>} : vector<1x32xf32>, vector<32x8xf32>, vector<1x8xf32> -> vector<1x8xf32>
    %22 = vector.broadcast %6 : f32 to vector<1x8xf32>
    %23 = arith.addf %21, %22 : vector<1x8xf32>
    %c0_22 = arith.constant 0 : index
    %c0_23 = arith.constant 0 : index
    %24 = vector.load %arg10[%c0_22, %c0_23] : memref<1x8xf32, #tpu.memory_space<vmem>>, vector<1x8xf32>
    tpu.vector_store %arg10[%c0_22, %c0_23], %23 {strides = array<i32>} : memref<1x8xf32, #tpu.memory_space<vmem>>, vector<1x8xf32>,
    return
  }
  func.func @transform_0(%arg0: i32) -> (i32, i32) {
    %c0_i32 = arith.constant 0 : i32
    %c0_i32_0 = arith.constant 0 : i32
    return %arg0, %c0_i32 : i32, i32
  }
  func.func @transform_1(%arg0: i32) -> (i32, i32) {
    %c0_i32 = arith.constant 0 : i32
    %c0_i32_0 = arith.constant 0 : i32
    return %arg0, %c0_i32 : i32, i32
  }
  func.func @transform_2(%arg0: i32) -> (i32, i32) {
    %c0_i32 = arith.constant 0 : i32
    %c0_i32_0 = arith.constant 0 : i32
    %c0_i32_1 = arith.constant 0 : i32
    return %c0_i32, %c0_i32_0 : i32, i32
  }
  func.func @transform_3(%arg0: i32) -> (i32, i32) {
    %c0_i32 = arith.constant 0 : i32
    %c0_i32_0 = arith.constant 0 : i32
    %c0_i32_1 = arith.constant 0 : i32
    return %c0_i32, %c0_i32_0 : i32, i32
  }
  func.func @transform_4(%arg0: i32) -> (i32, i32) {
    %c0_i32 = arith.constant 0 : i32
    %c0_i32_0 = arith.constant 0 : i32
    %c0_i32_1 = arith.constant 0 : i32
    return %c0_i32, %c0_i32_0 : i32, i32
  }
  func.func @transform_5(%arg0: i32) -> (i32, i32) {
    %c0_i32 = arith.constant 0 : i32
    %c0_i32_0 = arith.constant 0 : i32
    %c0_i32_1 = arith.constant 0 : i32
    return %c0_i32, %c0_i32_0 : i32, i32
  }
  func.func @transform_6(%arg0: i32) -> (i32, i32) {
    %c0_i32 = arith.constant 0 : i32
    %c0_i32_0 = arith.constant 0 : i32
    %c0_i32_1 = arith.constant 0 : i32
    return %c0_i32, %c0_i32_0 : i32, i32
  }
  func.func @transform_7(%arg0: i32) -> (i32, i32) {
    %c0_i32 = arith.constant 0 : i32
    %c0_i32_0 = arith.constant 0 : i32
    %c0_i32_1 = arith.constant 0 : i32
    return %c0_i32, %c0_i32_0 : i32, i32
  }
  func.func @transform_8(%arg0: i32) -> (i32, i32) {
    %c0_i32 = arith.constant 0 : i32
    %c0_i32_0 = arith.constant 0 : i32
    %c0_i32_1 = arith.constant 0 : i32
    return %c0_i32, %c0_i32_0 : i32, i32
  }
  func.func @transform_9(%arg0: i32) -> (i32, i32) {
    %c0_i32 = arith.constant 0 : i32
    %c0_i32_0 = arith.constant 0 : i32
    return %c0_i32, %arg0 : i32, i32
  }
}

</mosaic_0001>

<bundles_post_ra>
// kernel: critic_forward.1
= control target key start
LH: loop header
LB: loop body
LE: loop exit
PB: predicated region body
PF: predicated region fallthrough
CT: control target
= control target key end

     0   :  { %vm58_vm0 = vcmask 31744   ;;  %vm103_vm1 = vcmask 97280   ;;  %v334_v5 = vmov 0   ;;  %s476_s0 = inlined_call_operand.vmem [shape: f32[8,12], index: 0, kind: input, shape index: {}]   ;;  %s477_s1 = inlined_call_operand.vmem [shape: f32[8,4], index: 1, kind: input, shape index: {}]   ;;  %s478_s2 = inlined_call_operand.vmem [shape: f32[32,12], index: 2, kind: input, shape index: {}]   ;;  %s479_s3 = inlined_call_operand.vmem [shape: f32[32,4], index: 3, kind: input, shape index: {}]   ;;  %s480_s4 = inlined_call_operand.vmem [shape: f32[32,1], index: 4, kind: input, shape index: {}]   ;;  %s481_s5 = inlined_call_operand.vmem [shape: f32[32,32], index: 5, kind: input, shape index: {}]   ;;  %s482_s6 = inlined_call_operand.vmem [shape: f32[32,1], index: 6, kind: input, shape index: {}]   ;;  %s483_s7 = inlined_call_operand.vmem [shape: f32[1,32], index: 7, kind: input, shape index: {}]   ;;  %s484_s8 = inlined_call_operand.<no memory space> [shape: f32[1,1], index: 8, kind: input, shape index: {}]   ;;  %s485_s9 = inlined_call_operand.hbm [shape: f32[1,8], index: 9, kind: output, shape index: {}]  }
   0x1   :  { %v57_v0 = vld [vmem:[%s477_s1] sm:$0xff]  ;;  %v43_v4 = vld [vmem:[%s480_s4 + $0x8] sm:$0xff]  ;;  %306 = vset.pattern.permute.xlu1 %v334_v5  ;;  %305 = vset.pattern.permute.xlu0 %v334_v5  ;;  %v45_v6 = vld [vmem:[%s480_s4 + $0x18] sm:$0xff] }
   0x2   :  { %v56_v1 = vld [vmem:[%s476_s0] sm:$0xff]  ;;  %284 = vmatpush.xpose.msk.msra.mxu0 %vm58_vm0, %v57_v0  ;;  %155 = vperm.xlu1 %306, %v43_v4  }
   0x3   :  { %289 = vmatpush.xpose.msk.msra.mxu1 %vm103_vm1, %v56_v1  ;;  %v38_v2 = vld [vmem:[%s479_s3] sm:$0xff]  ;;  %165 = vperm.xlu0 %305, %v45_v6  }
   0x4   :  { %v34_v3 = vld [vmem:[%s478_s2] sm:$0xff]  ;;  %307 = vset.pattern.permute.xlu2 %v334_v5 }
   0x5   :  { %285 = vmatmul.msk.f32.vlgmr.msra.gmra.mxu0 %vm58_vm0, %v38_v2 }
   0x6   :  { %290 = vmatmul.msk.f32.vlgmr.msra.gmra.mxu1 %vm103_vm1, %v34_v3 }
   0x7   :  { %15 = vsyncpa [#allocation4], 0  ;;  %v42_v7 = vld [vmem:[%s480_s4] sm:$0xff]  ;;  %v44_v8 = vld [vmem:[%s480_s4 + $0x10] sm:$0xff]  ;;  %vm196_vm2 = vcmask 261120   ;;  %v242_v0 = vstv %s484_s8  ;;  %s335_s27 = smov [#allocation3]  }
   0x8   :  { %v39_v9 = vld [vmem:[%s479_s3 + $0x8] sm:$0xff]  ;;  %v50_v12 = vld [vmem:[%s482_s6] sm:$0xff]  ;;  %v40_v13 = vld [vmem:[%s479_s3 + $0x10] sm:$0xff]  ;;  %s273_s28 = sshll.u32 %s335_s27, 4  ;;  %s275_s30 = sshll.u32 %s485_s9, 4  ;;  %vm266_vm3 = vcmask 57344   ;;  %s274_s28 = int_to_ptr.vmem [resolvable:$true] %s273_s28  ;;  %s276_s30 = int_to_ptr.hbm [resolvable:$true] %s275_s30 }
   0x9   :  { %v35_v10 = vld [vmem:[%s478_s2 + $0x8] sm:$0xff]  ;;  %v36_v14 = vld [vmem:[%s478_s2 + $0x10] sm:$0xff]  ;;  %v41_v15 = vld [vmem:[%s479_s3 + $0x18] sm:$0xff] }
   0xa   :  { %150 = vperm.xlu1 %306, %v42_v7   ;;  %v51_v11 = vld [vmem:[%s482_s6 + $0x8] sm:$0xff]  ;;  %v37_v16 = vld [vmem:[%s478_s2 + $0x18] sm:$0xff]  ;;  %v52_v38 = vld [vmem:[%s482_s6 + $0x10] sm:$0xff] }
   0xb   :  { %160 = vperm.xlu0 %305, %v44_v8   ;;  %v53_v25 = vld [vmem:[%s482_s6 + $0x18] sm:$0xff]  ;;  %v46_v43 = vld [vmem:[%s481_s5] sm:$0xff]  ;;  %v47_v45 = vld [vmem:[%s481_s5 + $0x8] sm:$0xff] }
   0xc   :  { %193 = vperm.xlu2 %307, %v53_v25   ;;  %v49_v44 = vld [vmem:[%s481_s5 + $0x18] sm:$0xff]  ;;  %v48_v46 = vld [vmem:[%s481_s5 + $0x10] sm:$0xff]  ;;  %v54_v63 = vld [vmem:[%s483_s7] sm:$0x1] }
   0xd   :  { %286 = vmatmul.msk.f32.gmra.mxu0 %vm58_vm0, %v39_v9 }
   0xe   :  { %291 = vmatmul.msk.f32.gmra.mxu1 %vm103_vm1, %v35_v10 }
  0x12   :  { %178 = vperm.xlu1 %306, %v50_v12  }
  0x13   :  { %183 = vperm.xlu0 %305, %v51_v11  }
  0x14   :  { %188 = vperm.xlu2 %307, %v52_v38  }
  0x15   :  { %287 = vmatmul.msk.f32.gmra.mxu0 %vm58_vm0, %v40_v13 }
  0x16   :  { %292 = vmatmul.msk.f32.gmra.mxu1 %vm103_vm1, %v36_v14 }
  0x1d   :  { %288 = vmatmul.msk.f32.gmra.mxu0 %vm58_vm0, %v41_v15 }
  0x1e   :  { %293 = vmatmul.msk.f32.gmra.mxu1 %vm103_vm1, %v37_v16 }
  0x66   :  { %v194_v47 = vpop.permute.xlu2 %193 }
  0x6e   :  { %v189_v54 = vpop.permute.xlu2 %188 }
  0x74   :  { %v156_v24 = vpop.permute.xlu1 %155 }
  0x75   :  { %v166_v21 = vpop.permute.xlu0 %165 }
  0x7c   :  { %v151_v35 = vpop.permute.xlu1 %150 }
  0x7d   :  { %v161_v31 = vpop.permute.xlu0 %160 }
  0x82   :  { %v91_v17 = vpop.f32.mrf.mxu0 }
  0x83   :  { %v136_v18 = vpop.f32.mrf.mxu1 }
  0x84   :  { %v137_v32 = vadd.f32 %v136_v18, %v91_v17  ;;  %v179_v58 = vpop.permute.xlu1 %178 }
  0x85   :  { %v184_v53 = vpop.permute.xlu0 %183 }
  0x86   :  { %v168_v39 = vadd.f32 %v151_v35, %v137_v32 }
  0x88   :  { %v172_v42 = vmax.f32 %v168_v39, 0.0 }
  0x8a   :  { %v94_v19 = vpop.f32.mrf.mxu0 }
  0x8b   :  { %v139_v20 = vpop.f32.mrf.mxu1 }
  0x8c   :  { %v140_v29 = vadd.f32 %v139_v20, %v94_v19 }
  0x8e   :  { %v169_v37 = vadd.f32 %v156_v24, %v140_v29 }
  0x90   :  { %v173_v41 = vmax.f32 %v169_v37, 0.0 }
  0x92   :  { %v97_v22 = vpop.f32.mrf.mxu0 }
  0x93   :  { %v142_v23 = vpop.f32.mrf.mxu1 }
  0x94   :  { %v143_v26 = vadd.f32 %v142_v23, %v97_v22 }
  0x96   :  { %v170_v34 = vadd.f32 %v161_v31, %v143_v26 }
  0x98   :  { %v174_v40 = vmax.f32 %v170_v34, 0.0 }
  0x9a   :  { %v100_v27 = vpop.f32.mrf.mxu0 }
  0x9b   :  { %v145_v28 = vpop.f32.mrf.mxu1 }
  0x9c   :  { %v146_v30 = vadd.f32 %v145_v28, %v100_v27 }
  0x9e   :  { %v171_v33 = vadd.f32 %v166_v21, %v146_v30 }
  0xa0   :  { %v175_v36 = vmax.f32 %v171_v33, 0.0 }
  0xa2   :  { %221 = vmatpush.msra.mxu2 %v175_v36  ;;  %299 = vmatpush.msra.mxu3 %v175_v36 }
  0xa4   :  { %222 = vmatpush.msra.mxu2 %v174_v40  ;;  %300 = vmatpush.msra.mxu3 %v174_v40 }
  0xa6   :  { %223 = vmatpush.msra.mxu2 %v173_v41  ;;  %301 = vmatpush.msra.mxu3 %v173_v41 }
  0xa8   :  { %224 = vmatpush.msra.mxu2 %v172_v42  ;;  %302 = vmatpush.msra.mxu3 %v172_v42 }
  0xa9   :  { %294 = vmatmul.msk.f32.vlgmr.msra.gmra.mxu2 %vm196_vm2, %v46_v43  ;;  %297 = vmatmul.msk.f32.vlgmr.msra.gmra.mxu3 %vm196_vm2, %v49_v44 }
  0xb1   :  { %295 = vmatmul.msk.f32.gmra.mxu2 %vm196_vm2, %v47_v45 }
  0xb9   :  { %296 = vmatmul.msk.f32.gmra.mxu2 %vm196_vm2, %v48_v46 }
 0x12c   :  { %v226_v48 = vpop.f32.mrf.mxu2  ;;  %v235_v49 = vpop.f32.mrf.mxu3 }
 0x12d   :  { %v236_v50 = vadd.f32 %v235_v49, %v194_v47  ;;  %v227_v59 = vadd.f32 %v226_v48, %v179_v58 }
 0x12f   :  { %v241_v51 = vmax.f32 %v236_v50, 0.0  ;;  %v238_v62 = vmax.f32 %v227_v59, 0.0 }
 0x131   :  { %258 = vmatpush.msrb.mxu3 %v241_v51 }
 0x134   :  { %v229_v52 = vpop.f32.mrf.mxu2 }
 0x135   :  { %v230_v56 = vadd.f32 %v229_v52, %v184_v53 }
 0x137   :  { %v239_v61 = vmax.f32 %v230_v56, 0.0 }
 0x13c   :  { %v232_v55 = vpop.f32.mrf.mxu2 }
 0x13d   :  { %v233_v57 = vadd.f32 %v232_v55, %v189_v54 }
 0x13f   :  { %v240_v60 = vmax.f32 %v233_v57, 0.0 }
 0x141   :  { %259 = vmatpush.msrb.mxu3 %v240_v60 }
 0x143   :  { %260 = vmatpush.msrb.mxu3 %v239_v61 }
 0x145   :  { %261 = vmatpush.msrb.mxu3 %v238_v62 }
 0x146   :  { %298 = vmatmul.msk.f32.vlgmr.msrb.gmra.mxu3 %vm196_vm2, %v54_v63 }
 0x1c9   :  { %v263_v1 = vpop.f32.mrf.mxu3 }
 0x1ca   :  { %v264_v2 = vadd.f32 %v263_v1, %v242_v0 }
 0x1cc   :  { %267 = vst.msk [vmem:[#allocation3] sm:$0x1] %vm266_vm3, %v264_v2 }
 0x1cd   :  { %278 = dma.vmem_to_hbm [thread:$0]  %s274_s28, 16, %s276_s30, [#allocation4]  }
 0x1ce   :  { %332 = dma.done.wait [#allocation4], 16  }
 0x1cf   :  { %333 = vsyncadd [#allocation4], 4294967280 }
 0x1d0   :  { %283 = vsyncpa [#allocation4], 1 }

</bundles_post_ra>
